<compile_context>
chip_gen: v7x
topology: tpu7x:2x2x1
jax: 0.10.0
libtpu: 0.0.40
codegen_flags: <defaults>
</compile_context>

<pallas_src>
import math

import jax
import jax.numpy as jnp
from jax.experimental import pallas as pl
from jax.experimental.pallas import tpu as pltpu

# ----------------------------- configuration --------------------------------
POOLING_TYPE = "MEAN"       # one of CLS / MEAN / SUM / FLATTEN
MAX_SEQ_LEN = 8
ENCODER_DIM = 32
MLP_DIM = 64
NUM_CLASS = 10
DECODER_DROP_PROB = 0.1     # dropout is identity in eval mode
LEAKY_SLOPE = 0.01          # nn.LeakyReLU default negative_slope

LANE = 128                  # TPU lane width (last-dim padding target)
SUBLANE = 8                 # f32 sublane count (16 for bf16 packing)


def _round_up(x: int, m: int) -> int:
    return ((x + m - 1) // m) * m


# ------------------------------- kernel -------------------------------------
def classifier_kernel(x_ref, w1_ref, b1_ref, w2_ref, b2_ref, out_ref):
    """Fused (pooling+linear1) + LeakyReLU + linear2 for one batch tile.

    x_ref   : [TB, S*D]          lane-dense input slab (pooling pre-folded)
    w1_ref  : [S*D, MLP_PAD]     folded + lane-padded linear1 weight
    b1_ref  : [1, MLP_PAD]       f32 bias
    w2_ref  : [MLP_PAD, C_PAD]   lane-padded linear2 weight
    b2_ref  : [1, C_PAD]         f32 bias
    out_ref : [TB, C_PAD]        lane-dense logits (real ones in lanes 0..C-1)
    """
    # linear1 (pooling folded into w1) — MXU, f32 accumulation.
    h = jnp.dot(x_ref[...], w1_ref[...], preferred_element_type=jnp.float32)
    h = h + b1_ref[...]
    # LeakyReLU in f32 (VPU); padded MLP columns stay exactly 0.
    h = jnp.where(h >= 0.0, h, LEAKY_SLOPE * h)

    # dropout: eval mode -> identity (deterministic forward).
    # TODO(synk): training-mode dropout via pltpu.prng_seed / prng_random_bits.

    # linear2 — MXU, f32 accumulation; padded class lanes produce zeros.
    out = jnp.dot(h.astype(w2_ref.dtype), w2_ref[...],
                  preferred_element_type=jnp.float32)
    out = out + b2_ref[...]
    out_ref[...] = out.astype(out_ref.dtype)


# ------------------------ one-time parameter prep ----------------------------
def prepare_classifier_params(w1, b1, w2, b2, *, pooling_type, max_seq_len,
                              compute_dtype=jnp.float32):
    """Fold pooling into w1, transpose to [in, out], lane-pad, cast.

    w1: [MLP, in1] (torch layout), b1: [MLP], w2: [C, MLP], b2: [C].
    Returns (w1f, b1p, w2p, b2p, num_class) with:
      w1f: [S*D, MLP_PAD]  (or [in1, MLP_PAD] for FLATTEN), compute_dtype
      b1p: [1, MLP_PAD] f32;  w2p: [MLP_PAD, C_PAD] compute_dtype;  b2p: [1, C_PAD] f32
    """
    mlp_dim, in1 = w1.shape
    num_class = w2.shape[0]
    w1_t = w1.T  # [in1, MLP]

    if pooling_type == "FLATTEN":
        w1f = w1_t                                              # in1 == S*D already
    elif pooling_type == "CLS":
        w1f = jnp.pad(w1_t, ((0, (max_seq_len - 1) * in1), (0, 0)))
    elif pooling_type == "MEAN":
        w1f = jnp.concatenate([w1_t] * max_seq_len, axis=0) / float(max_seq_len)
    elif pooling_type == "SUM":
        w1f = jnp.concatenate([w1_t] * max_seq_len, axis=0)
    else:
        raise NotImplementedError("Pooling type is not supported.")

    mlp_pad = _round_up(mlp_dim, LANE)
    cls_pad = _round_up(num_class, LANE)

    w1f = jnp.pad(w1f, ((0, 0), (0, mlp_pad - mlp_dim))).astype(compute_dtype)
    w2p = jnp.pad(w2.T, ((0, mlp_pad - mlp_dim),
                         (0, cls_pad - num_class))).astype(compute_dtype)
    b1p = jnp.pad(b1.reshape(1, -1),
                  ((0, 0), (0, mlp_pad - mlp_dim))).astype(jnp.float32)
    b2p = jnp.pad(b2.reshape(1, -1),
                  ((0, 0), (0, cls_pad - num_class))).astype(jnp.float32)
    return w1f, b1p, w2p, b2p, num_class


# ------------------------------ wrapper --------------------------------------
def lra_single_forward(encoded, prepped, *, block_b=2048):
    """encoded: [B, S, D].  prepped: output of prepare_classifier_params.

    Returns logits [B, num_class] in the compute dtype of the prepped weights.
    block_b is the batch-tile knob; it is capped so the double-buffered
    input+output footprint stays well under every generation's scoped VMEM.
    """
    w1f, b1, w2, b2, num_class = prepped
    compute_dtype = w1f.dtype

    B = encoded.shape[0]
    # Contiguous [B, S, D] -> [B, S*D]: a free, lane-dense 2-D view.
    x = encoded.reshape(B, -1)
    if x.dtype != compute_dtype:
        # TODO(synk): have the encoder emit compute_dtype directly to avoid this cast copy.
        x = x.astype(compute_dtype)

    SD = x.shape[1]
    mlp_pad = w1f.shape[1]
    cls_pad = w2.shape[1]
    out_dtype = compute_dtype

    sub = 16 if jnp.dtype(compute_dtype).itemsize < 4 else SUBLANE

    # Cap the batch tile so 2x(double-buffered) in+out tiles fit ~12 MiB,
    # comfortably under v5e's 16 MiB scoped-VMEM default (weights are tiny).
    bytes_per_row = 2 * (SD * jnp.dtype(compute_dtype).itemsize
                         + cls_pad * jnp.dtype(out_dtype).itemsize)
    vmem_budget = 12 * 1024 * 1024
    tb_cap = max(sub, (vmem_budget // bytes_per_row) // sub * sub)
    block_b = max(sub, min(block_b, tb_cap))

    if B <= block_b:
        if B >= 512:
            # Keep grid >= 2 so v7x's two TensorCores both get work.
            TB = _round_up(-(-B // 2), sub)
        else:
            # Single full-dim block: no sublane rounding, no padding, no OOB.
            TB = B
    else:
        TB = (block_b // sub) * sub
    grid_b = pl.cdiv(B, TB)
    # If TB does not divide B, Pallas masks the boundary block's writes and the
    # garbage rows read there never reach valid output rows — so no jnp.pad of
    # the full activation tensor is ever needed.

    out = pl.pallas_call(
        classifier_kernel,
        out_shape=jax.ShapeDtypeStruct((B, cls_pad), out_dtype),
        grid=(grid_b,),
        in_specs=[
            pl.BlockSpec((TB, SD), lambda i: (i, 0)),          # batch-tiled input
            pl.BlockSpec((SD, mlp_pad), lambda i: (0, 0)),     # VMEM-resident weights
            pl.BlockSpec((1, mlp_pad), lambda i: (0, 0)),
            pl.BlockSpec((mlp_pad, cls_pad), lambda i: (0, 0)),
            pl.BlockSpec((1, cls_pad), lambda i: (0, 0)),
        ],
        out_specs=pl.BlockSpec((TB, cls_pad), lambda i: (i, 0)),
        compiler_params=pltpu.CompilerParams(
            dimension_semantics=("parallel",),
        ),
    )(x, w1f, b1, w2, b2)

    # TODO(synk): a fused downstream consumer should take the padded lane-dense
    #             [B, 128] block directly instead of materializing this slice.
    return out[:, :num_class]


# ---------------------- deterministic parameter init -------------------------
def init_params(key):
    in1 = MAX_SEQ_LEN * ENCODER_DIM if POOLING_TYPE == "FLATTEN" else ENCODER_DIM
    k1, k2 = jax.random.split(key)

    # linear1: kaiming_normal_(nonlinearity='leaky_relu', a=0) -> std = sqrt(2/fan_in)
    std1 = math.sqrt(2.0 / in1)
    w1 = std1 * jax.random.normal(k1, (MLP_DIM, in1), dtype=jnp.float32)
    b1 = jnp.zeros((MLP_DIM,), dtype=jnp.float32)

    # linear2: xavier_normal_(gain=1) -> std = sqrt(2/(fan_in+fan_out))
    std2 = math.sqrt(2.0 / (MLP_DIM + NUM_CLASS))
    w2 = std2 * jax.random.normal(k2, (NUM_CLASS, MLP_DIM), dtype=jnp.float32)
    b2 = jnp.zeros((NUM_CLASS,), dtype=jnp.float32)
    return w1, b1, w2, b2


# ------------------------------- reference -----------------------------------
def reference_forward(encoded, w1, b1, w2, b2, pooling_type):
    if pooling_type == "CLS":
        pooled = encoded[:, 0, :]
    elif pooling_type == "MEAN":
        pooled = encoded.mean(axis=1)
    elif pooling_type == "SUM":
        pooled = encoded.sum(axis=1)
    elif pooling_type == "FLATTEN":
        pooled = encoded.reshape(encoded.shape[0], -1)
    else:
        raise NotImplementedError("Pooling type is not supported.")
    h = pooled @ w1.T + b1
    h = jnp.where(h >= 0.0, h, LEAKY_SLOPE * h)
    return h @ w2.T + b2


# --------------------------------- main ---------------------------------------
if __name__ == "__main__":
    key = jax.random.PRNGKey(0)
    k_enc, k_par = jax.random.split(key)

    B = 2
    # "encoded" is what the (not-provided) xformer would produce: [B, S, D]
    encoded = jax.random.normal(
        k_enc, (B, MAX_SEQ_LEN, ENCODER_DIM), dtype=jnp.float32
    )
    w1, b1, w2, b2 = init_params(k_par)
    ref = reference_forward(encoded, w1, b1, w2, b2, POOLING_TYPE)

    # --- f32 compute path ---
    prepped_f32 = prepare_classifier_params(
        w1, b1, w2, b2, pooling_type=POOLING_TYPE, max_seq_len=MAX_SEQ_LEN,
        compute_dtype=jnp.float32)
    logits = jax.block_until_ready(lra_single_forward(encoded, prepped_f32))
    assert logits.shape == (B, NUM_CLASS)
    assert jnp.allclose(logits.astype(jnp.float32), ref, atol=1e-2, rtol=1e-2), \
        "f32 kernel mismatch vs reference"

    # --- bf16 compute path (halves HBM bytes on the memory-bound read) ---
    prepped_bf16 = prepare_classifier_params(
        w1, b1, w2, b2, pooling_type=POOLING_TYPE, max_seq_len=MAX_SEQ_LEN,
        compute_dtype=jnp.bfloat16)
    logits_bf16 = jax.block_until_ready(lra_single_forward(encoded, prepped_bf16))
    assert logits_bf16.shape == (B, NUM_CLASS)
    assert jnp.allclose(logits_bf16.astype(jnp.float32), ref, atol=6e-2, rtol=6e-2), \
        "bf16 kernel mismatch vs reference"

    print("KERNEL_OK")
</pallas_src>

<mosaic_0001>
module attributes {stable_mosaic.version = 11 : i64} {
  func.func @classifier_kernel(%arg0: i32, %arg1: memref<2x256xf32, #tpu.memory_space<vmem>>, %arg2: memref<256x128xf32, #tpu.memory_space<vmem>>, %arg3: memref<1x128xf32, #tpu.memory_space<vmem>>, %arg4: memref<128x128xf32, #tpu.memory_space<vmem>>, %arg5: memref<1x128xf32, #tpu.memory_space<vmem>>, %arg6: memref<2x128xf32, #tpu.memory_space<vmem>>) attributes {dimension_semantics = [#tpu.dimension_semantics<parallel>], iteration_bounds = array<i64: 1>, scalar_prefetch = 0 : i64, scratch_operands = 0 : i64, tpu.core_type = #tpu.core_type<tc>, window_params = [{transform_indices = @transform_0, window_bounds = array<i64: 2, 256>}, {pipeline_mode = #tpu.pipeline_mode<synchronous>, transform_indices = @transform_1, window_bounds = array<i64: 256, 128>}, {pipeline_mode = #tpu.pipeline_mode<synchronous>, transform_indices = @transform_2, window_bounds = array<i64: 1, 128>}, {pipeline_mode = #tpu.pipeline_mode<synchronous>, transform_indices = @transform_3, window_bounds = array<i64: 128, 128>}, {pipeline_mode = #tpu.pipeline_mode<synchronous>, transform_indices = @transform_4, window_bounds = array<i64: 1, 128>}, {transform_indices = @transform_5, window_bounds = array<i64: 2, 128>}]} {
    %c0 = arith.constant 0 : index
    %c0_0 = arith.constant 0 : index
    %0 = vector.load %arg1[%c0, %c0_0] : memref<2x256xf32, #tpu.memory_space<vmem>>, vector<2x256xf32>
    %c0_1 = arith.constant 0 : index
    %c0_2 = arith.constant 0 : index
    %1 = vector.load %arg2[%c0_1, %c0_2] : memref<256x128xf32, #tpu.memory_space<vmem>>, vector<256x128xf32>
    %cst = arith.constant dense<0.000000e+00> : vector<2x128xf32>
    %2 = tpu.matmul %0, %1, %cst {dimension_numbers = #tpu.dot_dimension_numbers<[1], [0], [0], [1], [0, 0, 1, 1], [], []>} : vector<2x256xf32>, vector<256x128xf32>, vector<2x128xf32> -> vector<2x128xf32>
    %c0_3 = arith.constant 0 : index
    %c0_4 = arith.constant 0 : index
    %3 = vector.load %arg3[%c0_3, %c0_4] : memref<1x128xf32, #tpu.memory_space<vmem>>, vector<1x128xf32>
    %4 = vector.broadcast %3 : vector<1x128xf32> to vector<2x128xf32>
    %5 = arith.addf %2, %4 : vector<2x128xf32>
    %cst_5 = arith.constant 0.000000e+00 : f32
    %6 = vector.broadcast %cst_5 : f32 to vector<2x128xf32>
    %7 = arith.cmpf oge, %5, %6 : vector<2x128xf32>
    %cst_6 = arith.constant 0.00999999977 : f32
    %8 = vector.broadcast %cst_6 : f32 to vector<2x128xf32>
    %9 = arith.mulf %8, %5 : vector<2x128xf32>
    %10 = arith.select %7, %5, %9 : vector<2x128xi1>, vector<2x128xf32>
    %c0_7 = arith.constant 0 : index
    %c0_8 = arith.constant 0 : index
    %11 = vector.load %arg4[%c0_7, %c0_8] : memref<128x128xf32, #tpu.memory_space<vmem>>, vector<128x128xf32>
    %cst_9 = arith.constant dense<0.000000e+00> : vector<2x128xf32>
    %12 = tpu.matmul %10, %11, %cst_9 {dimension_numbers = #tpu.dot_dimension_numbers<[1], [0], [0], [1], [0, 0, 1, 1], [], []>} : vector<2x128xf32>, vector<128x128xf32>, vector<2x128xf32> -> vector<2x128xf32>
    %c0_10 = arith.constant 0 : index
    %c0_11 = arith.constant 0 : index
    %13 = vector.load %arg5[%c0_10, %c0_11] : memref<1x128xf32, #tpu.memory_space<vmem>>, vector<1x128xf32>
    %14 = vector.broadcast %13 : vector<1x128xf32> to vector<2x128xf32>
    %15 = arith.addf %12, %14 : vector<2x128xf32>
    %c0_12 = arith.constant 0 : index
    %c0_13 = arith.constant 0 : index
    %16 = vector.load %arg6[%c0_12, %c0_13] : memref<2x128xf32, #tpu.memory_space<vmem>>, vector<2x128xf32>
    tpu.vector_store %arg6[%c0_12, %c0_13], %15 {strides = array<i32>} : memref<2x128xf32, #tpu.memory_space<vmem>>, vector<2x128xf32>,
    return
  }
  func.func @transform_0(%arg0: i32) -> (i32, i32) {
    %c0_i32 = arith.constant 0 : i32
    %c0_i32_0 = arith.constant 0 : i32
    return %arg0, %c0_i32 : i32, i32
  }
  func.func @transform_1(%arg0: i32) -> (i32, i32) {
    %c0_i32 = arith.constant 0 : i32
    %c0_i32_0 = arith.constant 0 : i32
    %c0_i32_1 = arith.constant 0 : i32
    return %c0_i32, %c0_i32_0 : i32, i32
  }
  func.func @transform_2(%arg0: i32) -> (i32, i32) {
    %c0_i32 = arith.constant 0 : i32
    %c0_i32_0 = arith.constant 0 : i32
    %c0_i32_1 = arith.constant 0 : i32
    return %c0_i32, %c0_i32_0 : i32, i32
  }
  func.func @transform_3(%arg0: i32) -> (i32, i32) {
    %c0_i32 = arith.constant 0 : i32
    %c0_i32_0 = arith.constant 0 : i32
    %c0_i32_1 = arith.constant 0 : i32
    return %c0_i32, %c0_i32_0 : i32, i32
  }
  func.func @transform_4(%arg0: i32) -> (i32, i32) {
    %c0_i32 = arith.constant 0 : i32
    %c0_i32_0 = arith.constant 0 : i32
    %c0_i32_1 = arith.constant 0 : i32
    return %c0_i32, %c0_i32_0 : i32, i32
  }
  func.func @transform_5(%arg0: i32) -> (i32, i32) {
    %c0_i32 = arith.constant 0 : i32
    %c0_i32_0 = arith.constant 0 : i32
    return %arg0, %c0_i32 : i32, i32
  }
}

</mosaic_0001>

<bundles_post_ra>
// kernel: tpu_custom_call.1
= control target key start
LH: loop header
LB: loop body
LE: loop exit
PB: predicated region body
PF: predicated region fallthrough
CT: control target
= control target key end

     0   :  { %10 = vsyncpa [#allocation3], 0  ;;  %s655_s0 = inlined_call_operand.hbm [shape: f32[2,256], index: 0, kind: input, shape index: {}]   ;;  %s656_s1 = inlined_call_operand.hbm [shape: f32[256,128], index: 1, kind: input, shape index: {}]   ;;  %s657_s2 = inlined_call_operand.vmem [shape: f32[1,128], index: 2, kind: input, shape index: {}]   ;;  %s658_s3 = inlined_call_operand.hbm [shape: f32[128,128], index: 3, kind: input, shape index: {}]   ;;  %s659_s4 = inlined_call_operand.vmem [shape: f32[1,128], index: 4, kind: input, shape index: {}]   ;;  %s660_s5 = inlined_call_operand.hbm [shape: f32[2,128], index: 5, kind: output, shape index: {}]  }
   0x1   :  { %11 = vsyncpa [#allocation6], 0 }
   0x2   :  { %12 = vsyncpa [#allocation4], 0  ;;  %s543_s18 = smov [#allocation5]   ;;  %s449_s22 = scalar_lea.hbm %s656_s1, 4096 }
   0x3   :  { %s28_s19 = sshll.u32 %s543_s18, 4  ;;  %p450_p0 = scmp.ne.s32.totalorder %s656_s1, %s449_s22  ;;  %s29_s19 = int_to_ptr.vmem [resolvable:$true] %s28_s19 }
   0x4   :  { %p453_p1 = scmp.lt.u32.totalorder %s449_s22, %s656_s1 }
   0x6   :  { %p455_p2 = pnand %p453_p1, %p450_p0 }
   0x8   :  { %458 = shalt.err (!%p455_p2)
}
   0x9   :  { %s459_s27 = scalar_lea.vmem %s29_s19, 4096  ;;  %p464_p4 = scmp.lt.s32.totalorder %s29_s19, %s29_s19 }
   0xa   :  { %p460_p3 = scmp.ne.s32.totalorder %s29_s19, %s459_s27  ;;  %p465_p5 = scmp.lt.s32.totalorder %s459_s27, %s459_s27 }
   0xc   :  { %p466_p6 = por %p465_p5, %p464_p4 }
   0xe   :  { %p467_p7 = pnand %p466_p6, %p460_p3 }
  0x10   :  { %470 = shalt.err (!%p467_p7)
}
  0x11   :  { %s544_s28 = smov 128   ;;  %s545_s29 = smov 8  }
  0x12   :  { %34 = dma.hbm_to_vmem [thread:$0]  %s656_s1, 4096, %s29_s19, [#allocation6], %s544_s28, %s544_s28, %s545_s29  }
  0x13   :  { %s546_s7 = smov [#allocation2]   ;;  %s547_s9 = smov [#allocation7]  }
  0x14   :  { %s19_s8 = sshll.u32 %s546_s7, 4  ;;  %s42_s10 = sshll.u32 %s547_s9, 4  ;;  %s20_s8 = int_to_ptr.vmem [resolvable:$true] %s19_s8  ;;  %s43_s10 = int_to_ptr.vmem [resolvable:$true] %s42_s10 }
  0x15   :  { %s471_s13 = scalar_lea.hbm %s655_s0, 64 }
  0x16   :  { %p472_p8 = scmp.ne.s32.totalorder %s655_s0, %s471_s13  ;;  %p475_p9 = scmp.lt.u32.totalorder %s471_s13, %s655_s0 }
  0x18   :  { %p477_p10 = pnand %p475_p9, %p472_p8 }
  0x1a   :  { %480 = shalt.err (!%p477_p10)
}
  0x1b   :  { %s481_s1 = scalar_lea.vmem %s20_s8, 64  ;;  %p486_p12 = scmp.lt.s32.totalorder %s20_s8, %s20_s8 }
  0x1c   :  { %p482_p11 = scmp.ne.s32.totalorder %s20_s8, %s481_s1  ;;  %p487_p13 = scmp.lt.s32.totalorder %s481_s1, %s481_s1 }
  0x1e   :  { %p488_p0 = por %p487_p13, %p486_p12 }
  0x20   :  { %p489_p1 = pnand %p488_p0, %p482_p11 }
  0x22   :  { %492 = shalt.err (!%p489_p1)
}
  0x23   :  { %22 = dma.hbm_to_vmem [thread:$0]  %s655_s0, 64, %s20_s8, [#allocation3]  }
  0x24   :  { %s493_s22 = scalar_lea.hbm %s658_s3, 2048 }
  0x25   :  { %p494_p2 = scmp.ne.s32.totalorder %s658_s3, %s493_s22  ;;  %p497_p3 = scmp.lt.u32.totalorder %s493_s22, %s658_s3 }
  0x27   :  { %p499_p4 = pnand %p497_p3, %p494_p2 }
  0x29   :  { %502 = shalt.err (!%p499_p4)
}
  0x2a   :  { %s503_s27 = scalar_lea.vmem %s43_s10, 2048  ;;  %p508_p6 = scmp.lt.s32.totalorder %s43_s10, %s43_s10 }
  0x2b   :  { %p504_p5 = scmp.ne.s32.totalorder %s43_s10, %s503_s27  ;;  %p509_p7 = scmp.lt.s32.totalorder %s503_s27, %s503_s27 }
  0x2d   :  { %p510_p8 = por %p509_p7, %p508_p6 }
  0x2f   :  { %p511_p9 = pnand %p510_p8, %p504_p5 }
  0x31   :  { %514 = shalt.err (!%p511_p9)
}
  0x32   :  { %48 = dma.hbm_to_vmem [thread:$0]  %s658_s3, 2048, %s43_s10, [#allocation6], %s544_s28, %s544_s28, %s545_s29  }
  0x33   :  { %537 = dma.done.wait [#allocation3], 64  }
  0x34   :  { %538 = vsyncadd [#allocation3], 4294967232 }
  0x35   :  { %539 = dma.done.wait [#allocation6], 6144  }
  0x36   :  { %540 = vsyncadd [#allocation6], 4294961152  ;;  %v548_v0 = vmov 0.0|0.0   ;;  %v77_v1 = vld [vmem:[#allocation5 + $0x80] sm:$0xff]  ;;  %v78_v2 = vld [vmem:[#allocation5 + $0x88] sm:$0xff]  ;;  %vm549_vm0 = vmmov 0  }
  0x37   :  { %416 = vmatprep.subr.bf16.mxu1 %v548_v0  ;;  %v61_v3 = vld [vmem:[#allocation5] sm:$0xff]  ;;  %v384_v4 = vpack.c.bf16 %v78_v2, %v77_v1  ;;  %v62_v5 = vld [vmem:[#allocation5 + $0x8] sm:$0xff]  ;;  %v79_v6 = vld [vmem:[#allocation5 + $0x90] sm:$0xff]  ;;  %s551_s7 = smov [#allocation8]  }
  0x38   :  { %v80_v7 = vld [vmem:[#allocation5 + $0x98] sm:$0xff]  ;;  %v386_v8 = vpack.c.bf16 %v62_v5, %v61_v3  ;;  %v63_v10 = vld [vmem:[#allocation5 + $0x10] sm:$0xff]  ;;  %v81_v12 = vld [vmem:[#allocation5 + $0xa0] sm:$0xff]  ;;  %s284_s8 = sshll.u32 %s551_s7, 4  ;;  %s285_s8 = int_to_ptr.vmem [resolvable:$true] %s284_s8 }
  0x39   :  { %v388_v9 = vpack.c.bf16 %v80_v7, %v79_v6  ;;  %v64_v11 = vld [vmem:[#allocation5 + $0x18] sm:$0xff]  ;;  %385 = vmatprep.subr.bf16.mxu0 %v384_v4  ;;  %v82_v13 = vld [vmem:[#allocation5 + $0xa8] sm:$0xff]  ;;  %v65_v16 = vld [vmem:[#allocation5 + $0x20] sm:$0xff]  ;;  %s515_s9 = scalar_lea.vmem %s285_s8, 32  ;;  %p520_p11 = scmp.lt.s32.totalorder %s285_s8, %s285_s8 }
  0x3a   :  { %387 = vmatpush3.bf16.msra.mxu0 %v386_v8  ;;  %v390_v14 = vpack.c.bf16 %v64_v11, %v63_v10  ;;  %v392_v15 = vpack.c.bf16 %v82_v13, %v81_v12  ;;  %v66_v17 = vld [vmem:[#allocation5 + $0x28] sm:$0xff]  ;;  %v83_v18 = vld [vmem:[#allocation5 + $0xb0] sm:$0xff]  ;;  %v84_v19 = vld [vmem:[#allocation5 + $0xb8] sm:$0xff]  ;;  %v550_v12 = vmov 0.0   ;;  %p516_p10 = scmp.ne.s32.totalorder %s285_s8, %s515_s9  ;;  %p521_p12 = scmp.lt.s32.totalorder %s515_s9, %s515_s9 }
  0x3b   :  { %389 = vmatprep.subr.bf16.mxu0 %v388_v9  ;;  %v394_v20 = vpack.c.bf16 %v66_v17, %v65_v16  ;;  %v396_v21 = vpack.c.bf16 %v84_v19, %v83_v18  ;;  %v67_v22 = vld [vmem:[#allocation5 + $0x30] sm:$0xff]  ;;  %v68_v23 = vld [vmem:[#allocation5 + $0x38] sm:$0xff]  ;;  %v85_v24 = vld [vmem:[#allocation5 + $0xc0] sm:$0xff]  ;;  %381 = vmatprep.mubr.msk.f32.mxu1 %vm549_vm0, %v550_v12 }
  0x3c   :  { %v86_v25 = vld [vmem:[#allocation5 + $0xc8] sm:$0xff]  ;;  %v625_v26 = vld.sshfl [vmem:[#allocation2] sm:$0x33 pattern:$0x76325410]  ;;  %v184_v28 = vld [vmem:[#allocation7] sm:$0xff]  ;;  %v398_v31 = vpack.c.bf16 %v68_v23, %v67_v22  ;;  %p522_p13 = por %p521_p12, %p520_p11 }
  0x3d   :  { %v108_v27 = vcombine.high %v625_v26, %v625_v26  ;;  %v185_v29 = vld [vmem:[#allocation7 + $0x8] sm:$0xff]  ;;  %v186_v30 = vld [vmem:[#allocation7 + $0x10] sm:$0xff]  ;;  %v187_v33 = vld [vmem:[#allocation7 + $0x18] sm:$0xff]  ;;  %v400_v34 = vpack.c.bf16 %v86_v25, %v85_v24 }
  0x3e   :  { %391 = vmatpush3.bf16.msra.mxu0 %v390_v14  ;;  %v417_v32 = vpack.c.bf16 %v185_v29, %v184_v28  ;;  %v69_v35 = vld [vmem:[#allocation5 + $0x40] sm:$0xff]  ;;  %v70_v36 = vld [vmem:[#allocation5 + $0x48] sm:$0xff]  ;;  %v87_v37 = vld [vmem:[#allocation5 + $0xd0] sm:$0xff]  ;;  %v420_v39 = vpack.c.bf16 %v187_v33, %v186_v30  ;;  %p523_p0 = pnand %p522_p13, %p516_p10 }
  0x3f   :  { %393 = vmatprep.subr.bf16.mxu0 %v392_v15  ;;  %175 = vmatprep.mubr.f32.mxu0 %v108_v27  ;;  %v88_v38 = vld [vmem:[#allocation5 + $0xd8] sm:$0xff]  ;;  %v188_v40 = vld [vmem:[#allocation7 + $0x20] sm:$0xff]  ;;  %v189_v41 = vld [vmem:[#allocation7 + $0x28] sm:$0xff]  ;;  %v402_v42 = vpack.c.bf16 %v70_v36, %v69_v35 }
  0x40   :  { %418 = vmatpush3.bf16.msra.mxu1 %v417_v32  ;;  %v404_v43 = vpack.c.bf16 %v88_v38, %v87_v37  ;;  %v71_v44 = vld [vmem:[#allocation5 + $0x50] sm:$0xff]  ;;  %v72_v45 = vld [vmem:[#allocation5 + $0x58] sm:$0xff]  ;;  %v89_v46 = vld [vmem:[#allocation5 + $0xe0] sm:$0xff]  ;;  %v423_v48 = vpack.c.bf16 %v189_v41, %v188_v40 }
  0x41   :  { %419 = vmatprep.subr.bf16.mxu1 %v548_v0  ;;  %v90_v47 = vld [vmem:[#allocation5 + $0xe8] sm:$0xff]  ;;  %v190_v49 = vld [vmem:[#allocation7 + $0x30] sm:$0xff]  ;;  %v191_v50 = vld [vmem:[#allocation7 + $0x38] sm:$0xff]  ;;  %v406_v51 = vpack.c.bf16 %v72_v45, %v71_v44 }
  0x42   :  { %395 = vmatpush3.bf16.msra.mxu0 %v394_v20  ;;  %v408_v52 = vpack.c.bf16 %v90_v47, %v89_v46  ;;  %v73_v53 = vld [vmem:[#allocation5 + $0x60] sm:$0xff]  ;;  %v74_v54 = vld [vmem:[#allocation5 + $0x68] sm:$0xff]  ;;  %v91_v55 = vld [vmem:[#allocation5 + $0xf0] sm:$0xff]  ;;  %v426_v57 = vpack.c.bf16 %v191_v50, %v190_v49 }
  0x43   :  { %397 = vmatprep.subr.bf16.mxu0 %v396_v21  ;;  %v92_v56 = vld [vmem:[#allocation5 + $0xf8] sm:$0xff]  ;;  %v192_v58 = vld [vmem:[#allocation7 + $0x40] sm:$0xff]  ;;  %v193_v59 = vld [vmem:[#allocation7 + $0x48] sm:$0xff]  ;;  %v410_v60 = vpack.c.bf16 %v74_v54, %v73_v53 }
  0x44   :  { %421 = vmatpush3.bf16.msra.mxu1 %v420_v39  ;;  %v412_v61 = vpack.c.bf16 %v92_v56, %v91_v55  ;;  %v75_v62 = vld [vmem:[#allocation5 + $0x70] sm:$0xff]  ;;  %v76_v63 = vld [vmem:[#allocation5 + $0x78] sm:$0xff]  ;;  %v429_v1 = vpack.c.bf16 %v193_v59, %v192_v58  ;;  %v196_v6 = vld [vmem:[#allocation7 + $0x60] sm:$0xff] }
  0x45   :  { %422 = vmatprep.subr.bf16.mxu1 %v548_v0  ;;  %v194_v2 = vld [vmem:[#allocation7 + $0x50] sm:$0xff]  ;;  %v195_v3 = vld [vmem:[#allocation7 + $0x58] sm:$0xff]  ;;  %v414_v4 = vpack.c.bf16 %v76_v63, %v75_v62  ;;  %v197_v7 = vld [vmem:[#allocation7 + $0x68] sm:$0xff] }
  0x46   :  { %399 = vmatpush3.bf16.msra.mxu0 %v398_v31  ;;  %v432_v5 = vpack.c.bf16 %v195_v3, %v194_v2  ;;  %v435_v8 = vpack.c.bf16 %v197_v7, %v196_v6  ;;  %v198_v9 = vld [vmem:[#allocation7 + $0x70] sm:$0xff]  ;;  %v199_v10 = vld [vmem:[#allocation7 + $0x78] sm:$0xff] }
  0x47   :  { %401 = vmatprep.subr.bf16.mxu0 %v400_v34  ;;  %v438_v11 = vpack.c.bf16 %v199_v10, %v198_v9  ;;  %v294_v14 = vld [vmem:[%s657_s2] ss:$0 sm:$0xff] }
  0x48   :  { %424 = vmatpush3.bf16.msra.mxu1 %v423_v48 }
  0x49   :  { %425 = vmatprep.subr.bf16.mxu1 %v548_v0 }
  0x4a   :  { %403 = vmatpush3.bf16.msra.mxu0 %v402_v42 }
  0x4b   :  { %405 = vmatprep.subr.bf16.mxu0 %v404_v43 }
  0x4c   :  { %427 = vmatpush3.bf16.msra.mxu1 %v426_v57 }
  0x4d   :  { %428 = vmatprep.subr.bf16.mxu1 %v548_v0 }
  0x4e   :  { %407 = vmatpush3.bf16.msra.mxu0 %v406_v51 }
  0x4f   :  { %409 = vmatprep.subr.bf16.mxu0 %v408_v52 }
  0x50   :  { %430 = vmatpush3.bf16.msra.mxu1 %v429_v1 }
  0x51   :  { %431 = vmatprep.subr.bf16.mxu1 %v548_v0 }
  0x52   :  { %411 = vmatpush3.bf16.msra.mxu0 %v410_v60 }
  0x53   :  { %413 = vmatprep.subr.bf16.mxu0 %v412_v61 }
  0x54   :  { %433 = vmatpush3.bf16.msra.mxu1 %v432_v5 }
  0x55   :  { %434 = vmatprep.subr.bf16.mxu1 %v548_v0 }
  0x56   :  { %415 = vmatpush3.bf16.msra.mxu0 %v414_v4 }
  0x58   :  { %436 = vmatpush3.bf16.msra.mxu1 %v435_v8 }
  0x59   :  { %176 = vmatmul.mubr.f32.vlgmr.msra.gmra.mrb[0].mxu0 %v625_v26  ;;  %437 = vmatprep.subr.bf16.mxu1 %v548_v0  ;;  %v296_v0 = vld [vmem:[%s659_s4] ss:$0 sm:$0xff] }
  0x5c   :  { %439 = vmatpush3.bf16.msra.mxu1 %v438_v11 }
 0x12c   :  { %v329_v13 = vpop.f32.mrb[0].mxu0 }
 0x12d   :  { %v330_v15 = vpop.f32.mrb[1].mxu0 }
 0x12e   :  { %v331_v16 = vadd.f32 %v330_v15, %v329_v13 }
 0x130   :  { %v178_v17 = vadd.f32 %v331_v16, %v294_v14 }
 0x132   :  { %vm181_vm1 = vcmp.ge.f32.partialorder %v178_v17, 0.0  ;;  %v182_v18 = vmul.f32 0.01, %v178_v17 }
 0x134   :  { %v183_v19 = vsel %vm181_vm1, %v178_v17, %v182_v18 }
 0x135   :  { %382 = vmatmul.mubr.f32.vlgmr.msra.gmra.mrb[0].mxu1 %v183_v19 }
 0x208   :  { %v273_v20 = vpop.f32.mrb[0].mxu1 }
 0x209   :  { %v274_v21 = vadd.f32 %v296_v0, %v273_v20  ;;  %v383_v22 = vpop.f32.mrb[1].mxu1 }
 0x20b   :  { %277 = vst [vmem:[#allocation8] sm:$0x3] %v274_v21 }
 0x20c   :  { %526 = shalt.err (!%p523_p0)
}
 0x20d   :  { %s527_s11 = scalar_lea.hbm %s660_s5, 32 }
 0x20e   :  { %p528_p1 = scmp.ne.s32.totalorder %s660_s5, %s527_s11  ;;  %p531_p2 = scmp.lt.u32.totalorder %s527_s11, %s660_s5 }
 0x210   :  { %p533_p3 = pnand %p531_p2, %p528_p1 }
 0x212   :  { %536 = shalt.err (!%p533_p3)
}
 0x213   :  { %287 = dma.vmem_to_hbm [thread:$0]  %s285_s8, 32, %s660_s5, [#allocation4]  }
 0x214   :  { %541 = dma.done.wait [#allocation4], 32  }
 0x215   :  { %542 = vsyncadd [#allocation4], 4294967264 }
 0x216   :  { %291 = vsyncpa [#allocation3], 1 }
 0x217   :  { %292 = vsyncpa [#allocation6], 1 }
 0x218   :  { %293 = vsyncpa [#allocation4], 1 }

</bundles_post_ra>
